<compile_context>
chip_gen: v6e
topology: v6e:2x2x1
jax: 0.10.0
libtpu: 0.0.40
codegen_flags: <defaults>
</compile_context>

<pallas_src>
import math

import numpy as np
import jax
import jax.numpy as jnp
from jax import lax
from jax.experimental import pallas as pl
from jax.experimental.pallas import tpu as pltpu


def _largest_divisor_leq(n, cap):
    t = max(1, min(n, cap))
    while n % t:
        t -= 1
    return t


# ----------------------- prologue: key projections ---------------------------
def _proj_kernel(x_ref, w_ref, o_ref):
    tb, n, d = x_ref.shape
    o_ref[...] = jnp.dot(
        x_ref[...].reshape(tb * n, d), w_ref[...],
        preferred_element_type=jnp.float32).reshape(tb, n, d)


def _project_keys(x, w_t, tile_b=32):
    """k = x @ w_t (w_t is [in, out], i.e. pre-transposed), computed once."""
    B, N, D = x.shape
    tb = _largest_divisor_leq(B, tile_b)
    return pl.pallas_call(
        _proj_kernel,
        out_shape=jax.ShapeDtypeStruct((B, N, D), jnp.float32),
        grid=(B // tb,),
        in_specs=[pl.BlockSpec((tb, N, D), lambda i: (i, 0, 0)),
                  pl.BlockSpec((D, D), lambda i: (0, 0))],
        out_specs=pl.BlockSpec((tb, N, D), lambda i: (i, 0, 0)),
        compiler_params=pltpu.CompilerParams(
            dimension_semantics=("parallel",),
            vmem_limit_bytes=48 * 1024 * 1024),
    )(x, w_t)


# ----------------------------- main kernel -----------------------------------
def _make_cross_kernel(tB1, N1, tB2, N2, D, H):
    M1 = tB1 * N1
    M2 = tB2 * N2
    G = tB1 * tB2                       # (b1, b2) pairs in this tile

    def kernel(v1_ref, k1_ref, v2_ref, k2_ref,
               w1a_ref, b1a_ref, w1b_ref, b1b_ref,
               w2a_ref, b2a_ref, w2b_ref, b2b_ref,
               score_ref):
        v1 = v1_ref[...]                # (tB1, N1, D)
        k1 = k1_ref[...]                # (tB1, N1, D), pre-scaled by 1/sqrt(D)
        v2 = v2_ref[...]                # (tB2, N2, D)
        k2 = k2_ref[...]                # (tB2, N2, D)

        k1_2d = k1.reshape(M1, D)
        k2_2d = k2.reshape(M2, D)

        # (1) ALL pairwise QK^T scores of this tile in ONE MXU matmul
        #     (A @ B^T via dot_general — no transposed copy of k2).
        s2d = lax.dot_general(
            k1_2d, k2_2d, (((1,), (1,)), ((), ())),
            preferred_element_type=jnp.float32)           # (M1, M2)

        def softmax_last(x):
            m = jnp.max(x, axis=-1, keepdims=True)
            e = jnp.exp(x - m)
            return e * pl.reciprocal(jnp.sum(e, axis=-1, keepdims=True),
                                     approx=False)

        # (2) cheap per-pair attention (softmax + AV), statically unrolled over
        #     the b2 sub-batch; the expensive SummaryAttn MLP is deferred to
        #     step (3) so it runs as a few big 2-D MXU matmuls.
        f1_parts = []                   # fused_v1 pieces: (M1, D), rows (b1,n1)
        f2_parts = []                   # fused_v2 pieces: (tB1*N2, D), rows (b1,n2)
        for jj in range(tB2):
            s_j = s2d[:, jj * N2:(jj + 1) * N2]           # (M1, N2)

            # image tokens attend over words  -> fused_v1
            p12 = softmax_last(s_j)
            f1_parts.append(jnp.dot(p12, v2[jj],
                                    preferred_element_type=jnp.float32))

            # word tokens attend over regions -> fused_v2 (reuse s_j: s21=s12^T)
            s_jT = jnp.swapaxes(s_j.reshape(tB1, N1, N2), 1, 2)   # (tB1, N2, N1)
            p21 = softmax_last(s_jT)
            f2 = jnp.einsum('bmn,bnd->bmd', p21, v1,
                            preferred_element_type=jnp.float32)   # (tB1, N2, D)
            f2_parts.append(f2.reshape(tB1 * N2, D))

        X1 = jnp.concatenate(f1_parts, axis=0)    # (G*N1, D), rows (b2, b1, n1)
        X2 = jnp.concatenate(f2_parts, axis=0)    # (G*N2, D), rows (b2, b1, n2)

        # (3) SummaryAttn (is_cat=False), head-mean folded into the weights:
        #     mean_h(attn_h @ x) == (mean_h attn_h) @ x.  One big MLP per side.
        def summary(x2d, n, wa, ba, wb, bb):
            hid = jnp.maximum(
                jnp.dot(x2d, wa, preferred_element_type=jnp.float32) + ba, 0.0)
            logits = (jnp.dot(hid, wb, preferred_element_type=jnp.float32)
                      + bb).reshape(G, n, H)
            m = jnp.max(logits, axis=1, keepdims=True)
            e = jnp.exp(logits - m)
            attn = e * pl.reciprocal(jnp.sum(e, axis=1, keepdims=True),
                                     approx=False)         # softmax over n
            attn_mean = jnp.mean(attn, axis=2)              # (G, n)
            x3 = x2d.reshape(G, n, D)
            return jnp.sum(attn_mean[:, :, None] * x3, axis=1)      # (G, D)

        def l2n(x, eps=1e-8):
            nrm = jnp.sqrt(jnp.sum(x * x, axis=-1, keepdims=True)) + eps
            return x * pl.reciprocal(nrm, approx=False)

        co_v1 = l2n(summary(X1, N1, w1a_ref[...], b1a_ref[...],
                            w1b_ref[...], b1b_ref[...]))
        co_v2 = l2n(summary(X2, N2, w2a_ref[...], b2a_ref[...],
                            w2b_ref[...], b2b_ref[...]))

        # (4) matching score for every (b1, b2) pair; single whole-tile store.
        prod = co_v1 * co_v2                                   # (G, D), rows (b2, b1)
        score_t = jnp.sum(prod.reshape(tB2, tB1, D), axis=-1)  # (tB2, tB1)
        score_ref[...] = score_t.T                             # (tB1, tB2)

    return kernel


def cross_attention_pallas(v1, v2, params, *, tile_b1=8, tile_b2=8):
    B1, N1, D = v1.shape
    B2, N2, _ = v2.shape
    H = params['w1b'].shape[0]
    scale = 1.0 / math.sqrt(D)

    # key projections computed once (scale folded into the image-key weight)
    k1 = _project_keys(v1, params['w_img'].T * scale)
    k2 = _project_keys(v2, params['w_txt'].T)

    tB1 = _largest_divisor_leq(B1, tile_b1)
    tB2 = _largest_divisor_leq(B2, tile_b2)
    grid = (B1 // tB1, B2 // tB2)

    kernel = _make_cross_kernel(tB1, N1, tB2, N2, D, H)

    in_specs = [
        pl.BlockSpec((tB1, N1, D), lambda i, j: (i, 0, 0)),   # v1 tile
        pl.BlockSpec((tB1, N1, D), lambda i, j: (i, 0, 0)),   # k1 tile
        pl.BlockSpec((tB2, N2, D), lambda i, j: (j, 0, 0)),   # v2 tile
        pl.BlockSpec((tB2, N2, D), lambda i, j: (j, 0, 0)),   # k2 tile
        pl.BlockSpec((D, D), lambda i, j: (0, 0)),            # w1a^T
        pl.BlockSpec((1, D), lambda i, j: (0, 0)),            # b1a
        pl.BlockSpec((D, H), lambda i, j: (0, 0)),            # w1b^T
        pl.BlockSpec((1, H), lambda i, j: (0, 0)),            # b1b
        pl.BlockSpec((D, D), lambda i, j: (0, 0)),            # w2a^T
        pl.BlockSpec((1, D), lambda i, j: (0, 0)),            # b2a
        pl.BlockSpec((D, H), lambda i, j: (0, 0)),            # w2b^T
        pl.BlockSpec((1, H), lambda i, j: (0, 0)),            # b2b
    ]
    out_spec = pl.BlockSpec((tB1, tB2), lambda i, j: (i, j))

    score = pl.pallas_call(
        kernel,
        out_shape=jax.ShapeDtypeStruct((B1, B2), jnp.float32),
        grid=grid,
        in_specs=in_specs,
        out_specs=out_spec,
        compiler_params=pltpu.CompilerParams(
            dimension_semantics=("parallel", "parallel"),
            vmem_limit_bytes=48 * 1024 * 1024),
    )(v1, k1, v2, k2,
      params['w1a'].T, params['b1a'], params['w1b'].T, params['b1b'],
      params['w2a'].T, params['b2a'], params['w2b'].T, params['b2b'])
    return score


# ----------------------------- pure-JAX reference ----------------------------
def _l2norm_ref(x, eps=1e-8):
    n = jnp.sqrt(jnp.sum(x * x, axis=-1, keepdims=True)) + eps
    return x / n


def cross_attention_ref(v1, v2, params):
    B1, N1, D = v1.shape
    B2, N2, _ = v2.shape
    k1 = v1 @ params['w_img'].T
    k2 = v2 @ params['w_txt'].T
    v1e = jnp.broadcast_to(v1[:, None], (B1, B2, N1, D))
    k1e = jnp.broadcast_to(k1[:, None], (B1, B2, N1, D))
    v2e = jnp.broadcast_to(v2[None, :], (B1, B2, N2, D))
    k2e = jnp.broadcast_to(k2[None, :], (B1, B2, N2, D))

    def qkv(q, k, v):
        s = jnp.einsum('...nd,...md->...nm', q, k) / np.sqrt(q.shape[-1])
        p = jax.nn.softmax(s, axis=-1)
        return jnp.einsum('...nm,...md->...nd', p, v)

    weighted_v1 = qkv(k2e, k1e, v1e)   # (B1, B2, N2, D)
    weighted_v2 = qkv(k1e, k2e, v2e)   # (B1, B2, N1, D)
    fused_v1, fused_v2 = weighted_v2, weighted_v1

    def summary(x, wa, ba, wb, bb):
        hid = jax.nn.relu(x @ wa.T + ba)
        logits = hid @ wb.T + bb
        scores = jnp.swapaxes(logits, -1, -2)
        p = jax.nn.softmax(scores, axis=-1)
        return jnp.mean(p @ x, axis=-2)

    co_v1 = summary(fused_v1, params['w1a'], params['b1a'],
                    params['w1b'], params['b1b'])
    co_v2 = summary(fused_v2, params['w2a'], params['b2a'],
                    params['w2b'], params['b2b'])
    co_v1 = _l2norm_ref(co_v1)
    co_v2 = _l2norm_ref(co_v2)
    return jnp.sum(co_v1 * co_v2, axis=-1)


# ----------------------------- parameters ------------------------------------
def init_params(key, dim, num_attn):
    ks = jax.random.split(key, 10)
    r = float(np.sqrt(6.0) / np.sqrt(dim + dim))       # Xavier (init_weights)
    lim = float(1.0 / np.sqrt(dim))                    # PyTorch Linear default

    def u(k, shape, lo, hi):
        return jax.random.uniform(k, shape, jnp.float32, lo, hi)

    return {
        'w_img': u(ks[0], (dim, dim), -r, r),          # img_key_fc.weight
        'w_txt': u(ks[1], (dim, dim), -r, r),          # txt_key_fc.weight
        'w1a': u(ks[2], (dim, dim), -lim, lim),        # reduce_layer_1 Linear0
        'b1a': u(ks[3], (1, dim), -lim, lim),
        'w1b': u(ks[4], (num_attn, dim), -lim, lim),   # reduce_layer_1 Linear1
        'b1b': u(ks[5], (1, num_attn), -lim, lim),
        'w2a': u(ks[6], (dim, dim), -lim, lim),        # reduce_layer_2 Linear0
        'b2a': u(ks[7], (1, dim), -lim, lim),
        'w2b': u(ks[8], (num_attn, dim), -lim, lim),   # reduce_layer_2 Linear1
        'b2b': u(ks[9], (1, num_attn), -lim, lim),
    }


if __name__ == "__main__":
    B1, N1 = 2, 8     # images x regions
    B2, N2 = 3, 6     # captions x words
    D, H = 32, 4      # dim, num_attn

    key = jax.random.PRNGKey(0)
    kp, kv1, kv2 = jax.random.split(key, 3)
    params = init_params(kp, D, H)
    v1 = jax.random.normal(kv1, (B1, N1, D), jnp.float32)
    v2 = jax.random.normal(kv2, (B2, N2, D), jnp.float32)

    out = cross_attention_pallas(v1, v2, params)
    out = jax.block_until_ready(out)

    ref = cross_attention_ref(v1, v2, params)
    assert out.shape == (B1, B2)
    np.testing.assert_allclose(np.asarray(out), np.asarray(ref),
                               rtol=2e-3, atol=2e-3)
    print("KERNEL_OK")
</pallas_src>

<mosaic_0001>
module attributes {stable_mosaic.version = 11 : i64} {
  func.func @_proj_kernel(%arg0: i32, %arg1: memref<2x8x32xf32, #tpu.memory_space<vmem>>, %arg2: memref<32x32xf32, #tpu.memory_space<vmem>>, %arg3: memref<2x8x32xf32, #tpu.memory_space<vmem>>) attributes {dimension_semantics = [#tpu.dimension_semantics<parallel>], iteration_bounds = array<i64: 1>, scalar_prefetch = 0 : i64, scratch_operands = 0 : i64, tpu.core_type = #tpu.core_type<tc>, window_params = [{transform_indices = @transform_0, window_bounds = array<i64: 2, 8, 32>}, {pipeline_mode = #tpu.pipeline_mode<synchronous>, transform_indices = @transform_1, window_bounds = array<i64: 32, 32>}, {transform_indices = @transform_2, window_bounds = array<i64: 2, 8, 32>}]} {
    %c0 = arith.constant 0 : index
    %c0_0 = arith.constant 0 : index
    %c0_1 = arith.constant 0 : index
    %0 = vector.load %arg1[%c0, %c0_0, %c0_1] : memref<2x8x32xf32, #tpu.memory_space<vmem>>, vector<2x8x32xf32>
    %1 = vector.shape_cast %0 : vector<2x8x32xf32> to vector<16x32xf32>
    %c0_2 = arith.constant 0 : index
    %c0_3 = arith.constant 0 : index
    %2 = vector.load %arg2[%c0_2, %c0_3] : memref<32x32xf32, #tpu.memory_space<vmem>>, vector<32x32xf32>
    %cst = arith.constant dense<0.000000e+00> : vector<16x32xf32>
    %3 = tpu.matmul %1, %2, %cst {dimension_numbers = #tpu.dot_dimension_numbers<[1], [0], [0], [1], [0, 0, 1, 1], [], []>} : vector<16x32xf32>, vector<32x32xf32>, vector<16x32xf32> -> vector<16x32xf32>
    %4 = vector.shape_cast %3 : vector<16x32xf32> to vector<2x8x32xf32>
    %c0_4 = arith.constant 0 : index
    %c0_5 = arith.constant 0 : index
    %c0_6 = arith.constant 0 : index
    %5 = vector.load %arg3[%c0_4, %c0_5, %c0_6] : memref<2x8x32xf32, #tpu.memory_space<vmem>>, vector<2x8x32xf32>
    tpu.vector_store %arg3[%c0_4, %c0_5, %c0_6], %4 {strides = array<i32>} : memref<2x8x32xf32, #tpu.memory_space<vmem>>, vector<2x8x32xf32>,
    return
  }
  func.func @transform_0(%arg0: i32) -> (i32, i32, i32) {
    %c0_i32 = arith.constant 0 : i32
    %c0_i32_0 = arith.constant 0 : i32
    %c0_i32_1 = arith.constant 0 : i32
    return %arg0, %c0_i32, %c0_i32_0 : i32, i32, i32
  }
  func.func @transform_1(%arg0: i32) -> (i32, i32) {
    %c0_i32 = arith.constant 0 : i32
    %c0_i32_0 = arith.constant 0 : i32
    %c0_i32_1 = arith.constant 0 : i32
    return %c0_i32, %c0_i32_0 : i32, i32
  }
  func.func @transform_2(%arg0: i32) -> (i32, i32, i32) {
    %c0_i32 = arith.constant 0 : i32
    %c0_i32_0 = arith.constant 0 : i32
    %c0_i32_1 = arith.constant 0 : i32
    return %arg0, %c0_i32, %c0_i32_0 : i32, i32, i32
  }
}

</mosaic_0001>

<bundles_post_ra>
// kernel: tpu_custom_call.1
= control target key start
LH: loop header
LB: loop body
LE: loop exit
PB: predicated region body
PF: predicated region fallthrough
CT: control target
= control target key end

     0   :  { %7 = vsyncpa [#allocation3], 0  ;;  %s280_s0 = inlined_call_operand.hbm [shape: f32[2,8,32], index: 0, kind: input, shape index: {}]   ;;  %s281_s1 = inlined_call_operand.hbm [shape: f32[32,32], index: 1, kind: input, shape index: {}]   ;;  %s282_s2 = inlined_call_operand.hbm [shape: f32[2,8,32], index: 2, kind: output, shape index: {}]  }
   0x1   :  { %8 = vsyncpa [#allocation6], 0 }
   0x2   :  { %9 = vsyncpa [#allocation4], 0  ;;  %s238_s9 = smov [#allocation2]  }
   0x3   :  { %s15_s10 = sshll.u32 %s238_s9, 4  ;;  %s16_s10 = int_to_ptr.vmem [resolvable:$true] %s15_s10 }
   0x4   :  { %s180_s11 = scalar_lea.vmem %s16_s10, 256  ;;  %p185_p1 = scmp.lt.s32.totalorder %s16_s10, %s16_s10 }
   0x5   :  { %p181_p0 = scmp.ne.s32.totalorder %s16_s10, %s180_s11  ;;  %p186_p2 = scmp.lt.s32.totalorder %s180_s11, %s180_s11 }
   0x7   :  { %p187_p3 = por %p186_p2, %p185_p1 }
   0x9   :  { %p188_p4 = pnand %p187_p3, %p181_p0 }
   0xb   :  { %191 = shalt.err (!%p188_p4)
}
   0xc   :  { %s239_s12 = smov 128   ;;  %s240_s13 = smov 8  }
   0xd   :  { %21 = dma.hbm_to_vmem [thread:$0]  %s280_s0, 256, %s16_s10, [#allocation3], %s239_s12, %s239_s12, %s240_s13  }
   0xe   :  { %s241_s16 = smov [#allocation5]  }
   0xf   :  { %s27_s17 = sshll.u32 %s241_s16, 4  ;;  %s28_s17 = int_to_ptr.vmem [resolvable:$true] %s27_s17 }
  0x10   :  { %s200_s18 = scalar_lea.vmem %s28_s17, 512  ;;  %p205_p6 = scmp.lt.s32.totalorder %s28_s17, %s28_s17 }
  0x11   :  { %p201_p5 = scmp.ne.s32.totalorder %s28_s17, %s200_s18  ;;  %p206_p7 = scmp.lt.s32.totalorder %s200_s18, %s200_s18 }
  0x13   :  { %p207_p8 = por %p206_p7, %p205_p6 }
  0x15   :  { %p208_p9 = pnand %p207_p8, %p201_p5 }
  0x17   :  { %211 = shalt.err (!%p208_p9)
}
  0x18   :  { %33 = dma.hbm_to_vmem [thread:$0]  %s281_s1, 512, %s28_s17, [#allocation6], %s239_s12, %s239_s12, %s240_s13  }
  0x19   :  { %232 = dma.done.wait [#allocation3], 256  }
  0x1a   :  { %233 = vsyncadd [#allocation3], 4294967040 }
  0x1b   :  { %234 = dma.done.wait [#allocation6], 512  }
  0x1c   :  { %235 = vsyncadd [#allocation6], 4294966784  ;;  %vm46_vm0 = vcmask 261120   ;;  %v45_v0 = vld [vmem:[#allocation5 + $0x18] sm:$0xff]  ;;  %v44_v1 = vld [vmem:[#allocation5 + $0x10] sm:$0xff]  ;;  %s242_s0 = smov [#allocation7]  }
  0x1d   :  { %156 = vmatprep.subr.mxu0 %v45_v0  ;;  %v40_v2 = vld [vmem:[#allocation2] sm:$0xff]  ;;  %v43_v3 = vld [vmem:[#allocation5 + $0x8] sm:$0xff]  ;;  %v42_v4 = vld [vmem:[#allocation5] sm:$0xff]  ;;  %s135_s1 = sshll.u32 %s242_s0, 4  ;;  %s136_s1 = int_to_ptr.vmem [resolvable:$true] %s135_s1 }
  0x1e   :  { %157 = vmatpush3.msra.mxu0 %v45_v0  ;;  %164 = vmatprep.mubr.msk.f32.mxu0 %vm46_vm0, %v40_v2  ;;  %v41_v5 = vld [vmem:[#allocation2 + $0x8] sm:$0xff]  ;;  %s212_s21 = scalar_lea.vmem %s136_s1, 256  ;;  %p217_p11 = scmp.lt.s32.totalorder %s136_s1, %s136_s1 }
  0x1f   :  { %158 = vmatprep.subr.mxu0 %v44_v1  ;;  %p213_p10 = scmp.ne.s32.totalorder %s136_s1, %s212_s21  ;;  %p218_p12 = scmp.lt.s32.totalorder %s212_s21, %s212_s21 }
  0x20   :  { %159 = vmatpush3.msra.mxu0 %v44_v1 }
  0x21   :  { %160 = vmatprep.subr.mxu0 %v43_v3  ;;  %p219_p13 = por %p218_p12, %p217_p11 }
  0x22   :  { %161 = vmatpush3.msra.mxu0 %v43_v3 }
  0x23   :  { %162 = vmatprep.subr.mxu0 %v42_v4  ;;  %p220_p0 = pnand %p219_p13, %p213_p10 }
  0x24   :  { %163 = vmatpush3.msra.mxu0 %v42_v4 }
  0x25   :  { %165 = vmatmul.mubr.msk.f32.vlgmr.msra.gmra.mxu0 %vm46_vm0, %v41_v5 }
  0xe5   :  { %v166_v6 = vpop.f32.mrf.mxu0 }
  0xe6   :  { %129 = vst.msk [vmem:[#allocation7 + $0x8] sm:$0xff] %vm46_vm0, %v166_v6 }
  0xe7   :  { %v119_v7 = vpop.f32.mrf.mxu0 }
  0xe8   :  { %128 = vst.msk [vmem:[#allocation7] sm:$0xff] %vm46_vm0, %v119_v7 }
  0xe9   :  { %223 = shalt.err (!%p220_p0)
}
  0xea   :  { %141 = dma.vmem_to_hbm [thread:$0]  %s136_s1, 256, %s282_s2, [#allocation4], %s239_s12, %s239_s12, %s240_s13  }
  0xeb   :  { %236 = dma.done.wait [#allocation4], 256  }
  0xec   :  { %237 = vsyncadd [#allocation4], 4294967040 }
  0xed   :  { %145 = vsyncpa [#allocation3], 1 }
  0xee   :  { %146 = vsyncpa [#allocation6], 1 }
  0xef   :  { %147 = vsyncpa [#allocation4], 1 }

</bundles_post_ra>
